<compile_context>
chip_gen: v7x
topology: tpu7x:2x2x1
jax: 0.10.0
libtpu: 0.0.40
codegen_flags: <defaults>
</compile_context>

<pallas_src>
import jax
import jax.numpy as jnp
from jax.experimental import pallas as pl
from jax.experimental.pallas import tpu as pltpu


# --------------------------------------------------------------------------- kernel
def _affine_kernel(x_ref, w_ref, b_ref, o_ref):
    # Single MXU matmul + broadcast bias add; output tile is lane-dense (N = 128k).
    o_ref[...] = (
        jnp.dot(x_ref[...], w_ref[...], preferred_element_type=jnp.float32)
        + b_ref[...]
    ).astype(o_ref.dtype)


# ----------------------------------------------------------------- parameter folding
def fold_affine_params(params, pad_to=128):
    """Fold BN into the Linears and collapse the 3-layer affine net into one affine map.

    Returns (w_eff, b_eff, ydim) with the output feature dim zero-padded to a
    multiple of `pad_to` lanes so the kernel's stores are unmasked.
    """
    w1 = params["w1"] * params["s1"]                       # [xdim, H]
    b1 = params["b1"] * params["s1"] + params["t1"]        # [1, H]
    w2 = params["w2"] * params["s2"]                       # [H, H]
    b2 = params["b2"] * params["s2"] + params["t2"]        # [1, H]
    w3, b3 = params["w3"], params["b3"]                    # [H, ydim], [1, ydim]

    w_eff = w1 @ w2 @ w3                                   # [xdim, ydim]
    b_eff = (b1 @ w2 + b2) @ w3 + b3                       # [1, ydim]

    ydim = w_eff.shape[1]
    n_pad = max(pad_to, ((ydim + pad_to - 1) // pad_to) * pad_to)
    w_eff = jnp.pad(w_eff, ((0, 0), (0, n_pad - ydim)))
    b_eff = jnp.pad(b_eff, ((0, 0), (0, n_pad - ydim)))
    return w_eff, b_eff, ydim


def _round_up(n, m):
    return ((n + m - 1) // m) * m


# ----------------------------------------------------------------------- entry point
def nn_solver_forward(x, params, *, block_b=None, use_bf16=False):
    """Pallas forward for NNSolver with probType='simple'.

    x: [B, xdim] float32.  params: dict of per-layer (pre-transposed) weights.
    """
    B, xdim = x.shape
    w_eff, b_eff, ydim = fold_affine_params(params)
    n_pad = w_eff.shape[1]

    if block_b is None:
        # Small batches: one tile (rounded up to 8 f32 sublanes), grid=(1,).
        # Large batches: 512-row tiles so v7x can shard the 'parallel' axis
        # across both TensorCores.
        block_b = _round_up(B, 8) if B <= 1024 else 512

    # Zero-pad the batch so it divides into whole tiles (rows sliced off below).
    b_padded = _round_up(B, block_b)
    if b_padded != B:
        x = jnp.pad(x, ((0, b_padded - B), (0, 0)))
    grid = (b_padded // block_b,)

    if use_bf16:
        # bf16 MXU inputs, f32 accumulation (v6e/v7x); bias stays f32.
        x_in = x.astype(jnp.bfloat16)
        w_in = w_eff.astype(jnp.bfloat16)
    else:
        x_in, w_in = x, w_eff

    out = pl.pallas_call(
        _affine_kernel,
        out_shape=jax.ShapeDtypeStruct((b_padded, n_pad), jnp.float32),
        grid_spec=pl.GridSpec(
            grid=grid,
            in_specs=[
                pl.BlockSpec((block_b, xdim), lambda i: (i, 0)),   # x batch tile
                pl.BlockSpec((xdim, n_pad), lambda i: (0, 0)),     # W_eff (invariant)
                pl.BlockSpec((1, n_pad), lambda i: (0, 0)),        # b_eff (invariant)
            ],
            out_specs=pl.BlockSpec((block_b, n_pad), lambda i: (i, 0)),
        ),
        compiler_params=pltpu.CompilerParams(
            dimension_semantics=("parallel",),
        ),
    )(x_in, w_in, b_eff)

    return out[:B, :ydim].astype(x.dtype)


# -------------------------------------------------------------------- init & reference
def make_params(key, xdim, hidden, ydim, eps=1e-5):
    """Deterministic init mirroring the PyTorch module's __init__.

    Linear weights: kaiming_normal_ (std = sqrt(2/fan_in)); stored transposed as
    [in, out].  Linear biases: PyTorch default U(-1/sqrt(fan_in), 1/sqrt(fan_in)).
    BatchNorm: default init (gamma=1, beta=0, running mean=0, var=1), eval mode,
    folded to per-feature scale/shift.
    """
    ks = jax.random.split(key, 6)

    def kaiming(k, fan_in, fan_out):
        std = jnp.sqrt(2.0 / fan_in)
        return (jax.random.normal(k, (fan_out, fan_in), jnp.float32) * std).T

    def bias(k, fan_in, fan_out):
        bound = 1.0 / jnp.sqrt(fan_in)
        return jax.random.uniform(k, (1, fan_out), jnp.float32, -bound, bound)

    bn_scale = jnp.full((1, hidden), 1.0 / jnp.sqrt(1.0 + eps), jnp.float32)
    bn_shift = jnp.zeros((1, hidden), jnp.float32)

    return {
        "w1": kaiming(ks[0], xdim, hidden), "b1": bias(ks[1], xdim, hidden),
        "s1": bn_scale, "t1": bn_shift,
        "w2": kaiming(ks[2], hidden, hidden), "b2": bias(ks[3], hidden, hidden),
        "s2": bn_scale, "t2": bn_shift,
        "w3": kaiming(ks[4], hidden, ydim), "b3": bias(ks[5], hidden, ydim),
    }


def reference_forward(x, p):
    """Layer-by-layer reference matching the PyTorch module (eval-mode BN)."""
    h = x @ p["w1"] + p["b1"]
    h = h * p["s1"] + p["t1"]
    h = h @ p["w2"] + p["b2"]
    h = h * p["s2"] + p["t2"]
    return h @ p["w3"] + p["b3"]


if __name__ == "__main__":
    # Shapes consistent with the module: data.xdim=16, hiddenSize=182 -> H=32,
    # data.ydim=8, batch=16, probType='simple'.
    B, xdim, hidden, ydim = 16, 16, 32, 8

    key = jax.random.PRNGKey(0)
    k_x, k_p = jax.random.split(key)
    x = jax.random.normal(k_x, (B, xdim), jnp.float32)
    params = make_params(k_p, xdim, hidden, ydim)

    out = nn_solver_forward(x, params)
    out = jax.block_until_ready(out)

    ref = reference_forward(x, params)
    assert out.shape == (B, ydim)
    assert jnp.allclose(out, ref, atol=1e-4, rtol=1e-4), "mismatch vs reference"

    print("KERNEL_OK")
</pallas_src>

<mosaic_0001>
module attributes {stable_mosaic.version = 11 : i64} {
  func.func @_affine_kernel(%arg0: i32, %arg1: memref<16x16xf32, #tpu.memory_space<vmem>>, %arg2: memref<16x128xf32, #tpu.memory_space<vmem>>, %arg3: memref<1x128xf32, #tpu.memory_space<vmem>>, %arg4: memref<16x128xf32, #tpu.memory_space<vmem>>) attributes {dimension_semantics = [#tpu.dimension_semantics<parallel>], iteration_bounds = array<i64: 1>, scalar_prefetch = 0 : i64, scratch_operands = 0 : i64, tpu.core_type = #tpu.core_type<tc>, window_params = [{transform_indices = @transform_0, window_bounds = array<i64: 16, 16>}, {pipeline_mode = #tpu.pipeline_mode<synchronous>, transform_indices = @transform_1, window_bounds = array<i64: 16, 128>}, {pipeline_mode = #tpu.pipeline_mode<synchronous>, transform_indices = @transform_2, window_bounds = array<i64: 1, 128>}, {transform_indices = @transform_3, window_bounds = array<i64: 16, 128>}]} {
    %c0 = arith.constant 0 : index
    %c0_0 = arith.constant 0 : index
    %0 = vector.load %arg1[%c0, %c0_0] : memref<16x16xf32, #tpu.memory_space<vmem>>, vector<16x16xf32>
    %c0_1 = arith.constant 0 : index
    %c0_2 = arith.constant 0 : index
    %1 = vector.load %arg2[%c0_1, %c0_2] : memref<16x128xf32, #tpu.memory_space<vmem>>, vector<16x128xf32>
    %cst = arith.constant dense<0.000000e+00> : vector<16x128xf32>
    %2 = tpu.matmul %0, %1, %cst {dimension_numbers = #tpu.dot_dimension_numbers<[1], [0], [0], [1], [0, 0, 1, 1], [], []>} : vector<16x16xf32>, vector<16x128xf32>, vector<16x128xf32> -> vector<16x128xf32>
    %c0_3 = arith.constant 0 : index
    %c0_4 = arith.constant 0 : index
    %3 = vector.load %arg3[%c0_3, %c0_4] : memref<1x128xf32, #tpu.memory_space<vmem>>, vector<1x128xf32>
    %4 = vector.broadcast %3 : vector<1x128xf32> to vector<16x128xf32>
    %5 = arith.addf %2, %4 : vector<16x128xf32>
    %c0_5 = arith.constant 0 : index
    %c0_6 = arith.constant 0 : index
    %6 = vector.load %arg4[%c0_5, %c0_6] : memref<16x128xf32, #tpu.memory_space<vmem>>, vector<16x128xf32>
    tpu.vector_store %arg4[%c0_5, %c0_6], %5 {strides = array<i32>} : memref<16x128xf32, #tpu.memory_space<vmem>>, vector<16x128xf32>,
    return
  }
  func.func @transform_0(%arg0: i32) -> (i32, i32) {
    %c0_i32 = arith.constant 0 : i32
    %c0_i32_0 = arith.constant 0 : i32
    return %arg0, %c0_i32 : i32, i32
  }
  func.func @transform_1(%arg0: i32) -> (i32, i32) {
    %c0_i32 = arith.constant 0 : i32
    %c0_i32_0 = arith.constant 0 : i32
    %c0_i32_1 = arith.constant 0 : i32
    return %c0_i32, %c0_i32_0 : i32, i32
  }
  func.func @transform_2(%arg0: i32) -> (i32, i32) {
    %c0_i32 = arith.constant 0 : i32
    %c0_i32_0 = arith.constant 0 : i32
    %c0_i32_1 = arith.constant 0 : i32
    return %c0_i32, %c0_i32_0 : i32, i32
  }
  func.func @transform_3(%arg0: i32) -> (i32, i32) {
    %c0_i32 = arith.constant 0 : i32
    %c0_i32_0 = arith.constant 0 : i32
    return %arg0, %c0_i32 : i32, i32
  }
}

</mosaic_0001>

<bundles_post_ra>
// kernel: tpu_custom_call.1
= control target key start
LH: loop header
LB: loop body
LE: loop exit
PB: predicated region body
PF: predicated region fallthrough
CT: control target
= control target key end

     0   :  { %8 = vsyncpa [#allocation3], 0  ;;  %s324_s0 = inlined_call_operand.hbm [shape: f32[16,16], index: 0, kind: input, shape index: {}]   ;;  %s325_s1 = inlined_call_operand.hbm [shape: f32[16,128], index: 1, kind: input, shape index: {}]   ;;  %s326_s2 = inlined_call_operand.vmem [shape: f32[1,128], index: 2, kind: input, shape index: {}]   ;;  %s327_s3 = inlined_call_operand.hbm [shape: f32[16,128], index: 3, kind: output, shape index: {}]  }
   0x1   :  { %9 = vsyncpa [#allocation6], 0 }
   0x2   :  { %10 = vsyncpa [#allocation4], 0  ;;  %s251_s12 = smov [#allocation2]   ;;  %s179_s16 = scalar_lea.hbm %s324_s0, 256 }
   0x3   :  { %s16_s13 = sshll.u32 %s251_s12, 4  ;;  %p180_p0 = scmp.ne.s32.totalorder %s324_s0, %s179_s16  ;;  %s17_s13 = int_to_ptr.vmem [resolvable:$true] %s16_s13 }
   0x4   :  { %p183_p1 = scmp.lt.u32.totalorder %s179_s16, %s324_s0 }
   0x6   :  { %p185_p2 = pnand %p183_p1, %p180_p0 }
   0x8   :  { %188 = shalt.err (!%p185_p2)
}
   0x9   :  { %s189_s21 = scalar_lea.vmem %s17_s13, 256  ;;  %p194_p4 = scmp.lt.s32.totalorder %s17_s13, %s17_s13 }
   0xa   :  { %p190_p3 = scmp.ne.s32.totalorder %s17_s13, %s189_s21  ;;  %p195_p5 = scmp.lt.s32.totalorder %s189_s21, %s189_s21 }
   0xc   :  { %p196_p6 = por %p195_p5, %p194_p4 }
   0xe   :  { %p197_p7 = pnand %p196_p6, %p190_p3 }
  0x10   :  { %200 = shalt.err (!%p197_p7)
}
  0x11   :  { %s252_s22 = smov 128   ;;  %s253_s23 = smov 8  }
  0x12   :  { %22 = dma.hbm_to_vmem [thread:$0]  %s324_s0, 256, %s17_s13, [#allocation3], %s252_s22, %s252_s22, %s253_s23  }
  0x13   :  { %s254_s26 = smov [#allocation5]   ;;  %s201_s30 = scalar_lea.hbm %s325_s1, 256 }
  0x14   :  { %s28_s27 = sshll.u32 %s254_s26, 4  ;;  %p202_p8 = scmp.ne.s32.totalorder %s325_s1, %s201_s30  ;;  %s29_s27 = int_to_ptr.vmem [resolvable:$true] %s28_s27 }
  0x15   :  { %p205_p9 = scmp.lt.u32.totalorder %s201_s30, %s325_s1 }
  0x17   :  { %p207_p10 = pnand %p205_p9, %p202_p8 }
  0x19   :  { %210 = shalt.err (!%p207_p10)
}
  0x1a   :  { %s211_s8 = scalar_lea.vmem %s29_s27, 256  ;;  %p216_p12 = scmp.lt.s32.totalorder %s29_s27, %s29_s27 }
  0x1b   :  { %p212_p11 = scmp.ne.s32.totalorder %s29_s27, %s211_s8  ;;  %p217_p13 = scmp.lt.s32.totalorder %s211_s8, %s211_s8 }
  0x1d   :  { %p218_p0 = por %p217_p13, %p216_p12 }
  0x1f   :  { %p219_p1 = pnand %p218_p0, %p212_p11 }
  0x21   :  { %222 = shalt.err (!%p219_p1)
}
  0x22   :  { %34 = dma.hbm_to_vmem [thread:$0]  %s325_s1, 256, %s29_s27, [#allocation6], %s252_s22, %s252_s22, %s253_s23  }
  0x23   :  { %245 = dma.done.wait [#allocation3], 256  }
  0x24   :  { %246 = vsyncadd [#allocation3], 4294967040 }
  0x25   :  { %247 = dma.done.wait [#allocation6], 256  }
  0x26   :  { %248 = vsyncadd [#allocation6], 4294967040  ;;  %vm54_vm0 = vcmask 130048   ;;  %v45_v0 = vld [vmem:[#allocation5] sm:$0xff]  ;;  %v46_v1 = vld [vmem:[#allocation5 + $0x8] sm:$0xff]  ;;  %s255_s12 = smov [#allocation7]  }
  0x27   :  { %v43_v2 = vld [vmem:[#allocation2] sm:$0xff]  ;;  %v170_v3 = vpack.c.bf16 %v46_v1, %v45_v0  ;;  %v44_v4 = vld [vmem:[#allocation2 + $0x8] sm:$0xff]  ;;  %s143_s1 = sshll.u32 %s255_s12, 4  ;;  %s144_s1 = int_to_ptr.vmem [resolvable:$true] %s143_s1 }
  0x28   :  { %167 = vmatprep.mubr.msk.f32.mxu0 %vm54_vm0, %v43_v2  ;;  %v156_v5 = vld [vmem:[%s326_s2] ss:$0 sm:$0xff]  ;;  %s223_s13 = scalar_lea.vmem %s144_s1, 256  ;;  %p228_p3 = scmp.lt.s32.totalorder %s144_s1, %s144_s1 }
  0x29   :  { %171 = vmatprep.subr.bf16.mxu0 %v170_v3  ;;  %p224_p2 = scmp.ne.s32.totalorder %s144_s1, %s223_s13  ;;  %p229_p4 = scmp.lt.s32.totalorder %s223_s13, %s223_s13 }
  0x2a   :  { %173 = vmatpush3.bf16.msra.mxu0 %v170_v3 }
  0x2b   :  { %p230_p5 = por %p229_p4, %p228_p3 }
  0x2d   :  { %168 = vmatmul.mubr.msk.f32.vlgmr.msra.gmra.mrb[0].mxu0 %vm54_vm0, %v44_v4  ;;  %p231_p6 = pnand %p230_p5, %p224_p2 }
 0x100   :  { %v169_v6 = vpop.f32.mrb[0].mxu0 }
 0x101   :  { %v133_v7 = vadd.f32 %v169_v6, %v156_v5  ;;  %v127_v8 = vpop.f32.mrb[1].mxu0 }
 0x102   :  { %v128_v9 = vadd.f32 %v156_v5, %v127_v8 }
 0x103   :  { %137 = vst [vmem:[#allocation7 + $0x8] sm:$0xff] %v133_v7 }
 0x104   :  { %136 = vst [vmem:[#allocation7] sm:$0xff] %v128_v9 }
 0x105   :  { %234 = shalt.err (!%p231_p6)
}
 0x106   :  { %s235_s2 = scalar_lea.hbm %s327_s3, 256 }
 0x107   :  { %p236_p7 = scmp.ne.s32.totalorder %s327_s3, %s235_s2  ;;  %p239_p8 = scmp.lt.u32.totalorder %s235_s2, %s327_s3 }
 0x109   :  { %p241_p9 = pnand %p239_p8, %p236_p7 }
 0x10b   :  { %244 = shalt.err (!%p241_p9)
}
 0x10c   :  { %149 = dma.vmem_to_hbm [thread:$0]  %s144_s1, 256, %s327_s3, [#allocation4], %s252_s22, %s252_s22, %s253_s23  }
 0x10d   :  { %249 = dma.done.wait [#allocation4], 256  }
 0x10e   :  { %250 = vsyncadd [#allocation4], 4294967040 }
 0x10f   :  { %153 = vsyncpa [#allocation3], 1 }
 0x110   :  { %154 = vsyncpa [#allocation6], 1 }
 0x111   :  { %155 = vsyncpa [#allocation4], 1 }

</bundles_post_ra>
